<compile_context>
chip_gen: v5e
topology: v5e:2x2
jax: 0.10.0
libtpu: 0.0.40
codegen_flags: <defaults>
</compile_context>

<pallas_src>
import math

import jax
import jax.numpy as jnp
from jax.experimental import pallas as pl
from jax.experimental.pallas import tpu as pltpu


def _round_up(x, m):
    return ((x + m - 1) // m) * m


def _sublane_multiple(dtype):
    # Packed sublane tile: (8,128) for 4-byte, (16,128) for 2-byte,
    # (32,128) for 1-byte dtypes.
    return {4: 8, 2: 16, 1: 32}.get(jnp.dtype(dtype).itemsize, 8)


def _default_vmem_limit_bytes():
    # ~75% of physical VMEM where we can query it (-> ~96 MiB on v5e/v6e,
    # ~48 MiB on v7x); fall back to 48 MiB which is safe on every generation.
    try:
        info = pltpu.get_tpu_info()
        phys = getattr(info, "vmem_capacity_bytes", None)
        if phys:
            return min(int(phys) * 3 // 4, 100 * 1024 * 1024)
    except Exception:
        pass
    return 48 * 1024 * 1024


def _linear_kernel_bias(x_ref, w_ref, b_ref, o_ref, acc_ref):
    # x_ref: (tm, tk)  w_ref: (tk, tn)  b_ref: (1, tn)  o_ref: (tm, tn)
    # acc_ref: (tm, tn) f32 scratch, resident across the K grid axis.
    k = pl.program_id(2)

    @pl.when(k == 0)
    def _():
        # Seed the accumulator with the broadcast bias: bias is added exactly
        # once and the finalize branch becomes a pure cast + store.
        acc_ref[...] = jnp.broadcast_to(
            b_ref[...].astype(jnp.float32), acc_ref.shape
        )

    acc_ref[...] += jnp.dot(
        x_ref[...], w_ref[...], preferred_element_type=jnp.float32
    )

    @pl.when(k == pl.num_programs(2) - 1)
    def _():
        o_ref[...] = acc_ref[...].astype(o_ref.dtype)


def _linear_kernel_nobias(x_ref, w_ref, o_ref, acc_ref):
    k = pl.program_id(2)

    @pl.when(k == 0)
    def _():
        acc_ref[...] = jnp.zeros_like(acc_ref)

    acc_ref[...] += jnp.dot(
        x_ref[...], w_ref[...], preferred_element_type=jnp.float32
    )

    @pl.when(k == pl.num_programs(2) - 1)
    def _():
        o_ref[...] = acc_ref[...].astype(o_ref.dtype)


def linear_forward(x, weight_t, bias=None, *, tm=512, tn=1024, tk=512,
                   vmem_limit_bytes=None):
    """Forward pass of nn.Linear: y = x @ weight_t + bias.

    x:        (..., in_dim)
    weight_t: (in_dim, out_dim)  -- weight stored pre-transposed (persistent
                                    layout; no per-call transpose).
    bias:     (out_dim,) or None
    """
    in_dim, out_dim = weight_t.shape
    lead_shape = x.shape[:-1]

    x2d = x.reshape(-1, in_dim)  # (M, K)
    m = x2d.shape[0]

    # --- Tile selection --------------------------------------------------
    sub = _sublane_multiple(x.dtype)
    tm = min(tm, _round_up(m, sub))            # dtype-aware sublane rounding
    tn = min(tn, _round_up(out_dim, 256))      # keep 256-aligned for 2x256^2 MXU

    # Prefer >=2 blocks along the parallel N axis so both TensorCores of a
    # v7x chip get work (split N before shrinking the grid to 1x1).
    while (pl.cdiv(m, tm) * pl.cdiv(out_dim, tn)) < 2 \
            and tn >= 512 and out_dim > tn // 2:
        tn //= 2

    # K tiling: only the reduction axis ever needs *real* zero padding.
    # Small K -> single full-extent block, no padding at all.
    if in_dim % tk == 0:
        k_pad = 0
    elif in_dim <= tk:
        tk = in_dim
        k_pad = 0
    else:
        # TODO(synk): for ragged large in_dim, pre-pad weight_t along K at
        # param-load time to avoid this per-call weight pad.
        k_pad = _round_up(in_dim, tk) - in_dim

    x_in, w_in = x2d, weight_t
    if k_pad:
        x_in = jnp.pad(x2d, ((0, 0), (0, k_pad)))
        w_in = jnp.pad(weight_t, ((0, k_pad), (0, 0)))
    k_dim = in_dim + k_pad

    grid = (pl.cdiv(m, tm), pl.cdiv(out_dim, tn), k_dim // tk)

    # --- Specs / args -----------------------------------------------------
    in_specs = [
        pl.BlockSpec((tm, tk), lambda i, j, k: (i, k)),   # x tile
        pl.BlockSpec((tk, tn), lambda i, j, k: (k, j)),   # weight tile
    ]
    args = [x_in, w_in]
    if bias is not None:
        in_specs.append(pl.BlockSpec((1, tn), lambda i, j, k: (0, j)))
        args.append(bias.reshape(1, out_dim))
        kernel = _linear_kernel_bias
    else:
        kernel = _linear_kernel_nobias

    # --- Cost estimate: true itemsizes + tile re-read counts ---------------
    mi, nj = grid[0], grid[1]
    x_item = jnp.dtype(x_in.dtype).itemsize
    w_item = jnp.dtype(w_in.dtype).itemsize
    o_item = jnp.dtype(x.dtype).itemsize
    bytes_accessed = (m * k_dim * x_item * nj          # x re-read per N tile
                      + k_dim * out_dim * w_item * mi  # W re-read per M tile
                      + m * out_dim * o_item)          # output, one pass
    if bias is not None:
        bytes_accessed += out_dim * jnp.dtype(bias.dtype).itemsize

    if vmem_limit_bytes is None:
        vmem_limit_bytes = _default_vmem_limit_bytes()

    out = pl.pallas_call(
        kernel,
        out_shape=jax.ShapeDtypeStruct((m, out_dim), x.dtype),
        grid_spec=pltpu.PrefetchScalarGridSpec(
            num_scalar_prefetch=0,
            grid=grid,
            in_specs=in_specs,
            out_specs=pl.BlockSpec((tm, tn), lambda i, j, k: (i, j)),
            scratch_shapes=[pltpu.VMEM((tm, tn), jnp.float32)],
        ),
        compiler_params=pltpu.CompilerParams(
            dimension_semantics=("parallel", "parallel", "arbitrary"),
            vmem_limit_bytes=vmem_limit_bytes,
        ),
        cost_estimate=pl.CostEstimate(
            flops=2 * m * k_dim * out_dim,
            transcendentals=0,
            bytes_accessed=bytes_accessed,
        ),
    )(*args)

    return out.reshape(*lead_shape, out_dim)


def init_linear_params(key, in_dim, out_dim, w_init_gain="linear", with_bias=True):
    """Init matching the PyTorch module; weight stored pre-transposed as
    (in_dim, out_dim) so no transpose happens per forward call:
       weight ~ xavier_uniform_(gain=calculate_gain(w_init_gain))
       bias   ~ U(-1/sqrt(fan_in), 1/sqrt(fan_in))   (nn.Linear default)
    Xavier-uniform bounds are symmetric in (fan_in, fan_out), so sampling
    directly in the transposed layout is distribution-identical.
    """
    gain = 1.0  # calculate_gain('linear') == 1.0
    k_w, k_b = jax.random.split(key)
    w_bound = gain * math.sqrt(6.0 / (in_dim + out_dim))
    weight_t = jax.random.uniform(
        k_w, (in_dim, out_dim), minval=-w_bound, maxval=w_bound, dtype=jnp.float32
    )
    bias = None
    if with_bias:
        b_bound = 1.0 / math.sqrt(in_dim)
        bias = jax.random.uniform(
            k_b, (out_dim,), minval=-b_bound, maxval=b_bound, dtype=jnp.float32
        )
    return weight_t, bias


if __name__ == "__main__":
    key = jax.random.PRNGKey(0)
    k_x, k_p = jax.random.split(key)

    batch, seq, in_dim, out_dim = 2, 8, 32, 16
    x = jax.random.normal(k_x, (batch, seq, in_dim), dtype=jnp.float32)
    weight_t, bias = init_linear_params(k_p, in_dim, out_dim)

    fwd = jax.jit(linear_forward)
    y = fwd(x, weight_t, bias)
    jax.block_until_ready(y)

    # Sanity check (with bias) against plain-JAX reference.
    y_ref = x @ weight_t + bias
    assert y.shape == (batch, seq, out_dim)
    assert jnp.allclose(y, y_ref, atol=1e-5, rtol=1e-5)

    # Also exercise the bias-less kernel path.
    y_nb = jax.jit(lambda a, w: linear_forward(a, w, None))(x, weight_t)
    jax.block_until_ready(y_nb)
    assert jnp.allclose(y_nb, x @ weight_t, atol=1e-5, rtol=1e-5)

    print("KERNEL_OK")
</pallas_src>

<mosaic_0001>
module attributes {stable_mosaic.version = 11 : i64} {
  func.func @_linear_kernel_bias(%arg0: i32, %arg1: i32, %arg2: i32, %arg3: memref<16x32xf32, #tpu.memory_space<vmem>>, %arg4: memref<32x256xf32, #tpu.memory_space<vmem>>, %arg5: memref<1x256xf32, #tpu.memory_space<vmem>>, %arg6: memref<16x256xf32, #tpu.memory_space<vmem>>, %arg7: memref<16x256xf32, #tpu.memory_space<vmem>>) attributes {dimension_semantics = [#tpu.dimension_semantics<parallel>, #tpu.dimension_semantics<parallel>, #tpu.dimension_semantics<arbitrary>], iteration_bounds = array<i64: 1, 1, 1>, scalar_prefetch = 0 : i64, scratch_operands = 1 : i64, tpu.core_type = #tpu.core_type<tc>, window_params = [{transform_indices = @transform_0, window_bounds = array<i64: 16, 32>}, {transform_indices = @transform_1, window_bounds = array<i64: 32, 256>}, {transform_indices = @transform_2, window_bounds = array<i64: 1, 256>}, {transform_indices = @transform_3, window_bounds = array<i64: 16, 256>}]} {
    %c0_i32 = arith.constant 0 : i32
    %0 = arith.cmpi eq, %arg2, %c0_i32 : i32
    %1 = arith.extui %0 : i1 to i32
    %c0_i32_0 = arith.constant 0 : i32
    %2 = arith.cmpi ne, %1, %c0_i32_0 : i32
    scf.if %2 {
      %c0_10 = arith.constant 0 : index
      %c0_11 = arith.constant 0 : index
      %12 = vector.load %arg5[%c0_10, %c0_11] : memref<1x256xf32, #tpu.memory_space<vmem>>, vector<1x256xf32>
      %13 = vector.shape_cast %12 : vector<1x256xf32> to vector<1x256xf32>
      %14 = vector.broadcast %13 : vector<1x256xf32> to vector<16x256xf32>
      %c0_12 = arith.constant 0 : index
      %c0_13 = arith.constant 0 : index
      %15 = vector.load %arg7[%c0_12, %c0_13] : memref<16x256xf32, #tpu.memory_space<vmem>>, vector<16x256xf32>
      tpu.vector_store %arg7[%c0_12, %c0_13], %14 {strides = array<i32>} : memref<16x256xf32, #tpu.memory_space<vmem>>, vector<16x256xf32>,
    } else {
    }
    %c0 = arith.constant 0 : index
    %c0_1 = arith.constant 0 : index
    %3 = vector.load %arg7[%c0, %c0_1] : memref<16x256xf32, #tpu.memory_space<vmem>>, vector<16x256xf32>
    %c0_2 = arith.constant 0 : index
    %c0_3 = arith.constant 0 : index
    %4 = vector.load %arg3[%c0_2, %c0_3] : memref<16x32xf32, #tpu.memory_space<vmem>>, vector<16x32xf32>
    %c0_4 = arith.constant 0 : index
    %c0_5 = arith.constant 0 : index
    %5 = vector.load %arg4[%c0_4, %c0_5] : memref<32x256xf32, #tpu.memory_space<vmem>>, vector<32x256xf32>
    %cst = arith.constant dense<0.000000e+00> : vector<16x256xf32>
    %6 = tpu.matmul %4, %5, %cst {dimension_numbers = #tpu.dot_dimension_numbers<[1], [0], [0], [1], [0, 0, 1, 1], [], []>} : vector<16x32xf32>, vector<32x256xf32>, vector<16x256xf32> -> vector<16x256xf32>
    %7 = arith.addf %3, %6 : vector<16x256xf32>
    %c0_6 = arith.constant 0 : index
    %c0_7 = arith.constant 0 : index
    %8 = vector.load %arg7[%c0_6, %c0_7] : memref<16x256xf32, #tpu.memory_space<vmem>>, vector<16x256xf32>
    tpu.vector_store %arg7[%c0_6, %c0_7], %7 {strides = array<i32>} : memref<16x256xf32, #tpu.memory_space<vmem>>, vector<16x256xf32>,
    %c0_i32_8 = arith.constant 0 : i32
    %9 = arith.cmpi eq, %arg2, %c0_i32_8 : i32
    %10 = arith.extui %9 : i1 to i32
    %c0_i32_9 = arith.constant 0 : i32
    %11 = arith.cmpi ne, %10, %c0_i32_9 : i32
    scf.if %11 {
      %c0_10 = arith.constant 0 : index
      %c0_11 = arith.constant 0 : index
      %12 = vector.load %arg7[%c0_10, %c0_11] : memref<16x256xf32, #tpu.memory_space<vmem>>, vector<16x256xf32>
      %c0_12 = arith.constant 0 : index
      %c0_13 = arith.constant 0 : index
      %13 = vector.load %arg6[%c0_12, %c0_13] : memref<16x256xf32, #tpu.memory_space<vmem>>, vector<16x256xf32>
      tpu.vector_store %arg6[%c0_12, %c0_13], %12 {strides = array<i32>} : memref<16x256xf32, #tpu.memory_space<vmem>>, vector<16x256xf32>,
    } else {
    }
    return
  }
  func.func @transform_0(%arg0: i32, %arg1: i32, %arg2: i32) -> (i32, i32) {
    %c0_i32 = arith.constant 0 : i32
    return %arg0, %arg2 : i32, i32
  }
  func.func @transform_1(%arg0: i32, %arg1: i32, %arg2: i32) -> (i32, i32) {
    %c0_i32 = arith.constant 0 : i32
    return %arg2, %arg1 : i32, i32
  }
  func.func @transform_2(%arg0: i32, %arg1: i32, %arg2: i32) -> (i32, i32) {
    %c0_i32 = arith.constant 0 : i32
    %c0_i32_0 = arith.constant 0 : i32
    return %c0_i32, %arg1 : i32, i32
  }
  func.func @transform_3(%arg0: i32, %arg1: i32, %arg2: i32) -> (i32, i32) {
    %c0_i32 = arith.constant 0 : i32
    return %arg0, %arg1 : i32, i32
  }
}

</mosaic_0001>

<bundles_post_ra>
// kernel: linear_forward.1
= control target key start
LH: loop header
LB: loop body
LE: loop exit
PB: predicated region body
PF: predicated region fallthrough
CT: control target
= control target key end

     0   :  { %v89_v1 = vld [vmem:[#allocation3 + $0x38] sm:$0xff]  ;;  %v85_v5 = vld [vmem:[#allocation3 + $0x8] sm:$0xff]  ;;  %s274_s0 = inlined_call_operand.vmem [shape: f32[16,32], index: 0, kind: input, shape index: {}]   ;;  %s275_s1 = inlined_call_operand.vmem [shape: f32[32,16], index: 1, kind: input, shape index: {}]   ;;  %s276_s2 = inlined_call_operand.vmem [shape: f32[1,16], index: 2, kind: input, shape index: {}]   ;;  %s277_s3 = inlined_call_operand.hbm [shape: f32[16,16], index: 3, kind: output, shape index: {}]  }
   0x1   :  { %v53_v0 = vld [vmem:[%s275_s1 + $0x18] sm:$0xff]  ;;  %v51_v2 = vld [vmem:[%s275_s1 + $0x10] sm:$0xff]  ;;  %192 = vmatpush.msra.mxu3 %v89_v1  ;;  %v49_v4 = vld [vmem:[%s275_s1 + $0x8] sm:$0xff] }
   0x2   :  { %188 = vmatpush.msra.mxu2 %v53_v0  ;;  %v87_v3 = vld [vmem:[#allocation3 + $0x18] sm:$0xff] }
   0x3   :  { %8 = vsyncpa [#allocation5], 0  ;;  %109 = vmatpush.msra.mxu0 %v53_v0  ;;  %132 = vmatpush.msra.mxu1 %v89_v1  ;;  %v47_v6 = vld [vmem:[%s275_s1] sm:$0xff]  ;;  %v83_v7 = vld [vmem:[#allocation3 + $0x10] sm:$0xff]  ;;  %vm90_vm0 = vcmask 261120  }
   0x4   :  { %189 = vmatpush.msra.mxu2 %v51_v2  ;;  %193 = vmatpush.msra.mxu3 %v87_v3  ;;  %v81_v8 = vld [vmem:[%s274_s0 + $0x8] sm:$0xff]  ;;  %v80_v9 = vld [vmem:[%s274_s0] sm:$0xff] }
   0x5   :  { %110 = vmatpush.msra.mxu0 %v51_v2  ;;  %133 = vmatpush.msra.mxu1 %v87_v3  ;;  %v66_v10 = vld [vmem:[%s276_s2] sm:$0x3] }
   0x6   :  { %190 = vmatpush.msra.mxu2 %v49_v4  ;;  %194 = vmatpush.msra.mxu3 %v85_v5  ;;  %v68_v11 = vperm.slane %v66_v10, 0  ;;  %v69_v12 = vperm.slane %v66_v10, 1 }
   0x7   :  { %111 = vmatpush.msra.mxu0 %v49_v4  ;;  %134 = vmatpush.msra.mxu1 %v85_v5 }
   0x8   :  { %191 = vmatpush.msra.mxu2 %v47_v6  ;;  %195 = vmatpush.msra.mxu3 %v83_v7 }
   0x9   :  { %185 = vmatmul.msk.f32.vlgmr.msra.gmra.mxu2 %vm90_vm0, %v81_v8  ;;  %187 = vmatmul.msk.f32.vlgmr.msra.gmra.mxu3 %vm90_vm0, %v81_v8 }
   0xa   :  { %112 = vmatpush.msra.mxu0 %v47_v6  ;;  %135 = vmatpush.msra.mxu1 %v83_v7 }
   0xb   :  { %184 = vmatmul.msk.f32.vlgmr.msra.gmra.mxu0 %vm90_vm0, %v80_v9  ;;  %186 = vmatmul.msk.f32.vlgmr.msra.gmra.mxu1 %vm90_vm0, %v80_v9 }
  0x88   :  { %v114_v13 = vpop.f32.mrf.mxu0  ;;  %v137_v14 = vpop.f32.mrf.mxu1 }
  0x89   :  { %v143_v15 = vadd.f32 %v114_v13, %v68_v11  ;;  %v144_v16 = vadd.f32 %v137_v14, %v69_v12 }
  0x8b   :  { %158 = vst [vmem:[#allocation4] sm:$0xff] %v143_v15 }
  0x8c   :  { %v117_v17 = vpop.f32.mrf.mxu2  ;;  %159 = vst [vmem:[#allocation4 + $0x8] sm:$0xff] %v144_v16  ;;  %v140_v18 = vpop.f32.mrf.mxu3 }
  0x8d   :  { %v145_v19 = vadd.f32 %v117_v17, %v68_v11  ;;  %v146_v20 = vadd.f32 %v140_v18, %v69_v12 }
  0x8f   :  { %160 = vst [vmem:[#allocation4 + $0x10] sm:$0xff] %v145_v19 }
  0x90   :  { %161 = vst [vmem:[#allocation4 + $0x18] sm:$0xff] %v146_v20 }
  0x91   :  { %165 = vsyncadd [#allocation5], 256  ;;  %s168_s26 = sshll.u32 %s277_s3, 4  ;;  %s226_s2 = smov [#allocation4]   ;;  %s169_s26 = int_to_ptr.hbm [resolvable:$true] %s168_s26 }
  0x92   :  { %s166_s27 = sshll.u32 %s226_s2, 4  ;;  %s227_s28 = smov 256   ;;  %s167_s27 = int_to_ptr.vmem [resolvable:$true] %s166_s27 }
  0x93   :  { %s228_s29 = smov 128   ;;  %s229_s30 = smov 8  }
  0x94   :  { %174 = dma.vmem_to_hbm [thread:$0]  %s167_s27, 256, %s169_s26, [#allocation5], %s227_s28, %s228_s29, %s229_s30  }
  0x95   :  { %224 = dma.done.wait [#allocation5], 512  }
  0x96   :  { %225 = vsyncadd [#allocation5], 4294966784 }
  0x97   :  { %179 = vsyncpa [#allocation5], 1 }

</bundles_post_ra>
